<compile_context>
chip_gen: v6e
topology: v6e:2x2x1
jax: 0.10.0
libtpu: 0.0.40
codegen_flags: <defaults>
</compile_context>

<pallas_src>
import functools

import jax
import jax.numpy as jnp
from jax.experimental import pallas as pl
from jax.experimental.pallas import tpu as pltpu


def _bert_emb_sign_kernel(x_ref, w_ref, posb_ref, gamma_ref, beta_ref, o_ref,
                          *, eps, inv_h):
    # x_ref:     (tm, F)  sign-feature rows (bf16 or f32)
    # w_ref:     (F, H)   SpatialEmbeddings linear weight, stored (in, out)
    # posb_ref:  (tm, H)  position embeddings for these rows, linear bias folded in (bf16)
    # gamma/beta:(1, H)   LayerNorm affine params (f32)
    # o_ref:     (tm, H)  output tile
    h = jnp.dot(x_ref[...], w_ref[...], preferred_element_type=jnp.float32)
    h = h + posb_ref[...].astype(jnp.float32)

    # Single-pass LayerNorm statistics (kept in f32): var = E[h^2] - mean^2.
    s1 = jnp.sum(h, axis=-1, keepdims=True)
    s2 = jnp.sum(h * h, axis=-1, keepdims=True)
    mean = s1 * inv_h
    var = jnp.maximum(s2 * inv_h - mean * mean, 0.0)
    scale = jax.lax.rsqrt(var + eps) * gamma_ref[...]           # (tm, H), rsqrt on EUP
    o_ref[...] = ((h - mean) * scale + beta_ref[...]).astype(o_ref.dtype)
    # TODO(synk): if a v7x bundle dump shows the XLU as the saturated slot, move the
    # two lane reductions onto the idle MXU (h @ ones((H, 2)) trick).


def _vmem_capacity_bytes():
    try:
        return int(pltpu.get_tpu_info().vmem_capacity_bytes)
    except Exception:  # interpret mode / older runtimes
        return 128 * 1024 * 1024


def _round_up(n, m):
    return ((n + m - 1) // m) * m


def _per_row_vmem_bytes(F, H, x_isz, out_isz):
    # double-buffered x / posb(bf16) / out streams + ~2x the f32 (tm, H)
    # matmul / LayerNorm intermediate that Mosaic materializes.
    return 2 * (F * x_isz + H * 2 + H * out_isz) + 2 * H * 4


def _largest_dividing_tile(S, sub, cap):
    """Largest multiple of `sub` that divides S and is <= cap, else None."""
    cand = (min(cap, S) // sub) * sub
    while cand >= sub:
        if S % cand == 0:
            return cand
        cand -= sub
    return None


def fold_position_bias(pos_table, b):
    """Fold the SpatialEmbeddings linear bias into the position table (bf16).
    Hoist this out of the per-call path when pos_table / b are static."""
    return (pos_table.astype(jnp.float32)
            + b.astype(jnp.float32)[None, :]).astype(jnp.bfloat16)


def bert_embeddings_sign(x, w, b=None, pos_table=None, gamma=None, beta=None, *,
                         pos_plus_b=None, eps=1e-12, row_tile=None, out_dtype=None):
    """x: (B, S, F) float sign features; w: (F, H); returns (B, S, H)."""
    B, S, F = x.shape
    H = w.shape[1]
    if out_dtype is None:
        out_dtype = x.dtype
    if gamma is None or beta is None:
        raise ValueError("gamma/beta LayerNorm parameters are required")
    if pos_plus_b is None:
        if b is None or pos_table is None:
            raise ValueError("either pos_plus_b or (b, pos_table) must be given")
        pos_plus_b = fold_position_bias(pos_table, b)
    if pos_plus_b.shape[0] < S:
        raise ValueError(
            f"sequence length {S} exceeds position table rows {pos_plus_b.shape[0]}")

    x_isz = jnp.dtype(x.dtype).itemsize
    out_isz = jnp.dtype(out_dtype).itemsize
    sub = 16  # sublane pack: legal for bf16 streams, multiple of 8 for f32

    vmem_cap = _vmem_capacity_bytes()
    # Generation-aware target row tile (v7x: 64 MiB VMEM + 3.2 TB/s HBM -> 2048).
    target = row_tile if row_tile is not None else (
        2048 if vmem_cap <= 64 * 1024 * 1024 else 1024)
    budget = int(vmem_cap * 0.45)  # leave headroom for Mosaic internal scratch
    fit = max(budget // _per_row_vmem_bytes(F, H, x_isz, out_isz), sub)
    cap = max((min(target, fit) // sub) * sub, sub)

    x2 = x.reshape(B * S, F)
    posb_s = pos_plus_b[:S].astype(jnp.bfloat16)
    gamma2 = gamma.reshape(1, H).astype(jnp.float32)
    beta2 = beta.reshape(1, H).astype(jnp.float32)

    tm_a = _largest_dividing_tile(S, sub, cap)
    use_batch_grid = (tm_a is not None) and (S >= cap) and (tm_a * 2 >= cap)

    if use_batch_grid:
        # Mode A: batch innermost so the bf16 position block stays resident across
        # the whole batch (posb read from HBM exactly once).
        tm = tm_a
        nsb = S // tm
        rows = B * S
        grid = (nsb, B)
        posb = posb_s
        x_spec = pl.BlockSpec((tm, F), lambda si, bi: (bi * nsb + si, 0))
        w_spec = pl.BlockSpec((F, H), lambda si, bi: (0, 0))
        posb_spec = pl.BlockSpec((tm, H), lambda si, bi: (si, 0))
        bcast_spec = pl.BlockSpec((1, H), lambda si, bi: (0, 0))
        out_spec = pl.BlockSpec((tm, H), lambda si, bi: (bi * nsb + si, 0))
        dims = ("parallel", "parallel")
    else:
        # Mode B: flatten (B, S), pre-tile the position block across batch, pad to a
        # tile multiple -> large contiguous, lane/sublane-dense tiles for tiny S.
        R = B * S
        tm = max((min(cap, _round_up(R, sub)) // sub) * sub, sub)
        rows = _round_up(R, tm)
        grid = (rows // tm,)
        posb = jnp.tile(posb_s, (B, 1))
        if rows != R:
            x2 = jnp.pad(x2, ((0, rows - R), (0, 0)))
            posb = jnp.pad(posb, ((0, rows - R), (0, 0)))
        x_spec = pl.BlockSpec((tm, F), lambda i: (i, 0))
        w_spec = pl.BlockSpec((F, H), lambda i: (0, 0))
        posb_spec = pl.BlockSpec((tm, H), lambda i: (i, 0))
        bcast_spec = pl.BlockSpec((1, H), lambda i: (0, 0))
        out_spec = pl.BlockSpec((tm, H), lambda i: (i, 0))
        dims = ("parallel",)

    # VMEM budget: double-buffered streams + un-tracked f32 (tm, H) intermediate,
    # capped at 85% of this generation's physical VMEM.
    w_isz = jnp.dtype(w.dtype).itemsize
    est = (2 * tm * (F * x_isz + H * 2 + H * out_isz)
           + 2 * tm * H * 4
           + 2 * F * H * w_isz
           + 4 * H * 4
           + (2 << 20))
    vmem_limit = int(min(max(est, 32 * 1024 * 1024), int(vmem_cap * 0.85)))

    kernel = functools.partial(_bert_emb_sign_kernel, eps=float(eps), inv_h=1.0 / H)

    out = pl.pallas_call(
        kernel,
        out_shape=jax.ShapeDtypeStruct((rows, H), out_dtype),
        grid_spec=pltpu.PrefetchScalarGridSpec(
            num_scalar_prefetch=0,
            grid=grid,
            in_specs=[x_spec, w_spec, posb_spec, bcast_spec, bcast_spec],
            out_specs=out_spec),
        compiler_params=pltpu.CompilerParams(
            dimension_semantics=dims,
            vmem_limit_bytes=vmem_limit),
    )(x2, w, posb, gamma2, beta2)

    if rows != B * S:
        out = out[:B * S]
    return out.reshape(B, S, H)


def _reference(x, w, b, pos_table, gamma, beta, eps):
    """Pure-JAX reference (f32 math on the same inputs)."""
    xf = x.astype(jnp.float32)
    wf = w.astype(jnp.float32)
    h = jnp.einsum("bsf,fh->bsh", xf, wf) + b.astype(jnp.float32)
    h = h + pos_table[: x.shape[1]].astype(jnp.float32)[None]
    mean = jnp.mean(h, axis=-1, keepdims=True)
    var = jnp.mean((h - mean) ** 2, axis=-1, keepdims=True)
    return (h - mean) * jax.lax.rsqrt(var + eps) * gamma + beta


if __name__ == "__main__":
    # Small config consistent with the module:
    B, S = 2, 16                     # batch, sequence length
    input_size = 16                  # F: per-frame sign feature size
    hidden = 128                     # config.hidden_size (lane-dense)
    max_pos = 64                     # config.max_position_embeddings
    eps = 1e-12                      # config.layer_norm_eps

    key = jax.random.PRNGKey(0)
    kx, kw, kb, kp, kt, kx2 = jax.random.split(key, 6)

    # SpatialEmbeddings linear: (input_size -> hidden), stored transposed (F, H), bf16.
    w = (jax.random.normal(kw, (input_size, hidden), jnp.float32) * 0.02).astype(jnp.bfloat16)
    b = jax.random.normal(kb, (hidden,), jnp.float32) * 0.02
    # nn.Embedding(max_position_embeddings, hidden)
    pos_table = jax.random.normal(kp, (max_pos, hidden), jnp.float32) * 0.02
    # nn.Embedding(type_vocab_size, hidden) — computed but never added in forward.
    _token_type_table = jax.random.normal(kt, (2, hidden), jnp.float32) * 0.02
    # LayerNorm affine params.
    gamma = jnp.ones((hidden,), jnp.float32)
    beta = jnp.zeros((hidden,), jnp.float32)

    # Inputs: continuous sign features (the module's `input_ids` are floats), bf16 I/O.
    x = jax.random.normal(kx, (B, S, input_size), jnp.float32).astype(jnp.bfloat16)
    attention_mask = jnp.ones((B, 1, S), jnp.float32)  # accepted by module, unused here
    # TODO(synk): SpatialEmbeddings masked-norm / activation / scaling variants are
    # config-dependent and disabled here; only the default Linear projection path is implemented.

    # Parameter fold hoisted out of the per-call path (done once, reused).
    posb_full = fold_position_bias(pos_table, b)

    # Path 1: tiny S -> flattened, batch-pre-tiled grid (mode B).
    out = bert_embeddings_sign(x, w, pos_plus_b=posb_full, gamma=gamma, beta=beta, eps=eps)
    out = jax.block_until_ready(out)
    ref = _reference(x, w, b, pos_table, gamma, beta, eps)
    assert out.shape == (B, S, hidden)
    assert out.dtype == jnp.bfloat16
    err = float(jnp.max(jnp.abs(out.astype(jnp.float32) - ref)))
    assert jnp.allclose(out.astype(jnp.float32), ref, atol=2e-2, rtol=2e-2), err

    # Path 2: longer sequence with a forced small row tile -> batch-innermost grid
    # (mode A, position block resident across the batch axis).
    S2 = 64
    x_long = jax.random.normal(kx2, (B, S2, input_size), jnp.float32).astype(jnp.bfloat16)
    out2 = bert_embeddings_sign(x_long, w, b, pos_table, gamma, beta, eps=eps, row_tile=32)
    out2 = jax.block_until_ready(out2)
    ref2 = _reference(x_long, w, b, pos_table, gamma, beta, eps)
    assert out2.shape == (B, S2, hidden)
    assert out2.dtype == jnp.bfloat16
    err2 = float(jnp.max(jnp.abs(out2.astype(jnp.float32) - ref2)))
    assert jnp.allclose(out2.astype(jnp.float32), ref2, atol=2e-2, rtol=2e-2), err2

    print("KERNEL_OK")
</pallas_src>

<mosaic_0001>
module attributes {stable_mosaic.version = 11 : i64} {
  func.func @_bert_emb_sign_kernel(%arg0: i32, %arg1: memref<32x16xbf16, #tpu.memory_space<vmem>>, %arg2: memref<16x128xbf16, #tpu.memory_space<vmem>>, %arg3: memref<32x128xbf16, #tpu.memory_space<vmem>>, %arg4: memref<1x128xf32, #tpu.memory_space<vmem>>, %arg5: memref<1x128xf32, #tpu.memory_space<vmem>>, %arg6: memref<32x128xbf16, #tpu.memory_space<vmem>>) attributes {dimension_semantics = [#tpu.dimension_semantics<parallel>], iteration_bounds = array<i64: 1>, scalar_prefetch = 0 : i64, scratch_operands = 0 : i64, tpu.core_type = #tpu.core_type<tc>, window_params = [{transform_indices = @transform_0, window_bounds = array<i64: 32, 16>}, {pipeline_mode = #tpu.pipeline_mode<synchronous>, transform_indices = @transform_1, window_bounds = array<i64: 16, 128>}, {transform_indices = @transform_2, window_bounds = array<i64: 32, 128>}, {pipeline_mode = #tpu.pipeline_mode<synchronous>, transform_indices = @transform_3, window_bounds = array<i64: 1, 128>}, {pipeline_mode = #tpu.pipeline_mode<synchronous>, transform_indices = @transform_4, window_bounds = array<i64: 1, 128>}, {transform_indices = @transform_5, window_bounds = array<i64: 32, 128>}]} {
    %c0 = arith.constant 0 : index
    %c0_0 = arith.constant 0 : index
    %0 = vector.load %arg1[%c0, %c0_0] : memref<32x16xbf16, #tpu.memory_space<vmem>>, vector<32x16xbf16>
    %c0_1 = arith.constant 0 : index
    %c0_2 = arith.constant 0 : index
    %1 = vector.load %arg2[%c0_1, %c0_2] : memref<16x128xbf16, #tpu.memory_space<vmem>>, vector<16x128xbf16>
    %cst = arith.constant dense<0.000000e+00> : vector<32x128xf32>
    %2 = tpu.matmul %0, %1, %cst {dimension_numbers = #tpu.dot_dimension_numbers<[1], [0], [0], [1], [0, 0, 1, 1], [], []>} : vector<32x16xbf16>, vector<16x128xbf16>, vector<32x128xf32> -> vector<32x128xf32>
    %c0_3 = arith.constant 0 : index
    %c0_4 = arith.constant 0 : index
    %3 = vector.load %arg3[%c0_3, %c0_4] : memref<32x128xbf16, #tpu.memory_space<vmem>>, vector<32x128xbf16>
    %4 = arith.extf %3 : vector<32x128xbf16> to vector<32x128xf32>
    %5 = arith.addf %2, %4 : vector<32x128xf32>
    %cst_5 = arith.constant dense<0.000000e+00> : vector<32xf32>
    %6 = vector.multi_reduction <add>, %5, %cst_5 [1] : vector<32x128xf32> to vector<32xf32>
    %7 = vector.shape_cast %6 : vector<32xf32> to vector<32x1xf32>
    %8 = arith.mulf %5, %5 : vector<32x128xf32>
    %cst_6 = arith.constant dense<0.000000e+00> : vector<32xf32>
    %9 = vector.multi_reduction <add>, %8, %cst_6 [1] : vector<32x128xf32> to vector<32xf32>
    %10 = vector.shape_cast %9 : vector<32xf32> to vector<32x1xf32>
    %cst_7 = arith.constant 7.812500e-03 : f32
    %11 = vector.broadcast %cst_7 : f32 to vector<32x1xf32>
    %12 = arith.mulf %7, %11 : vector<32x1xf32>
    %cst_8 = arith.constant 7.812500e-03 : f32
    %13 = vector.broadcast %cst_8 : f32 to vector<32x1xf32>
    %14 = arith.mulf %10, %13 : vector<32x1xf32>
    %15 = arith.mulf %12, %12 : vector<32x1xf32>
    %16 = arith.subf %14, %15 : vector<32x1xf32>
    %cst_9 = arith.constant 0.000000e+00 : f32
    %17 = vector.broadcast %cst_9 : f32 to vector<32x1xf32>
    %18 = arith.maximumf %16, %17 : vector<32x1xf32>
    %cst_10 = arith.constant 9.99999996E-13 : f32
    %19 = vector.broadcast %cst_10 : f32 to vector<32x1xf32>
    %20 = arith.addf %18, %19 : vector<32x1xf32>
    %21 = math.rsqrt %20 : vector<32x1xf32>
    %c0_11 = arith.constant 0 : index
    %c0_12 = arith.constant 0 : index
    %22 = vector.load %arg4[%c0_11, %c0_12] : memref<1x128xf32, #tpu.memory_space<vmem>>, vector<1x128xf32>
    %23 = vector.broadcast %21 : vector<32x1xf32> to vector<32x128xf32>
    %24 = vector.broadcast %22 : vector<1x128xf32> to vector<32x128xf32>
    %25 = arith.mulf %23, %24 : vector<32x128xf32>
    %26 = vector.broadcast %12 : vector<32x1xf32> to vector<32x128xf32>
    %27 = arith.subf %5, %26 : vector<32x128xf32>
    %28 = arith.mulf %27, %25 : vector<32x128xf32>
    %c0_13 = arith.constant 0 : index
    %c0_14 = arith.constant 0 : index
    %29 = vector.load %arg5[%c0_13, %c0_14] : memref<1x128xf32, #tpu.memory_space<vmem>>, vector<1x128xf32>
    %30 = vector.broadcast %29 : vector<1x128xf32> to vector<32x128xf32>
    %31 = arith.addf %28, %30 : vector<32x128xf32>
    %32 = arith.truncf %31 : vector<32x128xf32> to vector<32x128xbf16>
    %c0_15 = arith.constant 0 : index
    %c0_16 = arith.constant 0 : index
    %33 = vector.load %arg6[%c0_15, %c0_16] : memref<32x128xbf16, #tpu.memory_space<vmem>>, vector<32x128xbf16>
    tpu.vector_store %arg6[%c0_15, %c0_16], %32 {strides = array<i32>} : memref<32x128xbf16, #tpu.memory_space<vmem>>, vector<32x128xbf16>,
    return
  }
  func.func @transform_0(%arg0: i32) -> (i32, i32) {
    %c0_i32 = arith.constant 0 : i32
    %c0_i32_0 = arith.constant 0 : i32
    return %arg0, %c0_i32 : i32, i32
  }
  func.func @transform_1(%arg0: i32) -> (i32, i32) {
    %c0_i32 = arith.constant 0 : i32
    %c0_i32_0 = arith.constant 0 : i32
    %c0_i32_1 = arith.constant 0 : i32
    return %c0_i32, %c0_i32_0 : i32, i32
  }
  func.func @transform_2(%arg0: i32) -> (i32, i32) {
    %c0_i32 = arith.constant 0 : i32
    %c0_i32_0 = arith.constant 0 : i32
    return %arg0, %c0_i32 : i32, i32
  }
  func.func @transform_3(%arg0: i32) -> (i32, i32) {
    %c0_i32 = arith.constant 0 : i32
    %c0_i32_0 = arith.constant 0 : i32
    %c0_i32_1 = arith.constant 0 : i32
    return %c0_i32, %c0_i32_0 : i32, i32
  }
  func.func @transform_4(%arg0: i32) -> (i32, i32) {
    %c0_i32 = arith.constant 0 : i32
    %c0_i32_0 = arith.constant 0 : i32
    %c0_i32_1 = arith.constant 0 : i32
    return %c0_i32, %c0_i32_0 : i32, i32
  }
  func.func @transform_5(%arg0: i32) -> (i32, i32) {
    %c0_i32 = arith.constant 0 : i32
    %c0_i32_0 = arith.constant 0 : i32
    return %arg0, %c0_i32 : i32, i32
  }
}

</mosaic_0001>

<bundles_post_ra>
// kernel: tpu_custom_call.1
= control target key start
LH: loop header
LB: loop body
LE: loop exit
PB: predicated region body
PF: predicated region fallthrough
CT: control target
= control target key end

     0   :  { %vm52_vm0 = vcmask 130048   ;;  %s371_s0 = inlined_call_operand.vmem [shape: bf16[32,16], index: 0, kind: input, shape index: {}]   ;;  %s372_s1 = inlined_call_operand.vmem [shape: bf16[16,128], index: 1, kind: input, shape index: {}]   ;;  %s373_s2 = inlined_call_operand.vmem [shape: bf16[32,128], index: 2, kind: input, shape index: {}]   ;;  %s374_s3 = inlined_call_operand.vmem [shape: f32[1,128], index: 3, kind: input, shape index: {}]   ;;  %s375_s4 = inlined_call_operand.vmem [shape: f32[1,128], index: 4, kind: input, shape index: {}]   ;;  %s376_s5 = inlined_call_operand.hbm [shape: bf16[32,128], index: 5, kind: output, shape index: {}]  }
   0x1   :  { %v269_v0 = vld [vmem:[%s372_s1] sm:$0xff]   ;;  %v271_v2 = vld [vmem:[%s371_s0 + $0x8] sm:$0xff]  }
   0x2   :  { %v270_v1 = vld [vmem:[%s371_s0] sm:$0xff]   ;;  %260 = vmatprep.subr.bf16.mxu0 %v269_v0 }
   0x3   :  { %261 = vmatpush3.bf16.msra.mxu0 %v269_v0  ;;  %262 = vmatprep.mubr.msk.bf16.mxu0 %vm52_vm0, %v270_v1 }
   0x4   :  { %10 = vsyncpa [#allocation3], 0  ;;  %v255_v3 = vld [vmem:[%s373_s2 + $0x8] sm:$0xff]   ;;  %v238_v4 = vld [vmem:[%s373_s2] sm:$0xff]  }
   0x5   :  { %v243_v5 = vunpack.c.l.bf16 %v255_v3  ;;  %v239_v6 = vunpack.c.l.bf16 %v238_v4  ;;  %v244_v9 = vunpack.c.h.bf16 %v255_v3  ;;  %v240_v12 = vunpack.c.h.bf16 %v238_v4  ;;  %v227_v54 = vld [vmem:[%s374_s3] ss:$0 sm:$0xff]  ;;  %s302_s3 = smov [#allocation2]  }
   0x6   :  { %263 = vmatmul.mubr.msk.bf16.vlgmr.msra.gmra.mxu0 %vm52_vm0, %v271_v2  ;;  %v228_v0 = vld [vmem:[%s375_s4] ss:$0 sm:$0xff]  ;;  %s211_s29 = sshll.u32 %s302_s3, 4  ;;  %s212_s29 = int_to_ptr.vmem [resolvable:$true] %s211_s29 }
   0x7   :  { %s280_s30 = scalar_lea.vmem %s212_s29, 256  ;;  %p285_p1 = scmp.lt.s32.totalorder %s212_s29, %s212_s29 }
   0x8   :  { %p281_p0 = scmp.ne.s32.totalorder %s212_s29, %s280_s30  ;;  %p286_p2 = scmp.lt.s32.totalorder %s280_s30, %s280_s30 }
   0xa   :  { %p287_p3 = por %p286_p2, %p285_p1 }
   0xc   :  { %p288_p4 = pnand %p287_p3, %p281_p0 }
  0xc6   :  { %v264_v7 = vpop.f32.mrf.mxu0 }
  0xc7   :  { %v350_v8 = vadd.f32 %v264_v7, %v243_v5 }
  0xc8   :  { %v93_v10 = vpop.f32.mrf.mxu0 }
  0xc9   :  { %v94_v11 = vadd.f32 %v239_v6, %v93_v10  ;;  %112 = vadd.xlane.f32.xlu1 %v350_v8  ;;  %v118_v20 = vmul.f32 %v350_v8, %v350_v8 }
  0xca   :  { %v265_v13 = vpop.f32.mrf.mxu0 }
  0xcb   :  { %v353_v14 = vadd.f32 %v265_v13, %v244_v9  ;;  %108 = vadd.xlane.f32.xlu0 %v94_v11  ;;  %v116_v17 = vmul.f32 %v94_v11, %v94_v11 }
  0xcc   :  { %v96_v15 = vpop.f32.mrf.mxu0 }
  0xcd   :  { %v97_v16 = vadd.f32 %v240_v12, %v96_v15  ;;  %114 = vadd.xlane.f32.xlu1 %v353_v14  ;;  %v119_v19 = vmul.f32 %v353_v14, %v353_v14 }
  0xcf   :  { %120 = vadd.xlane.f32.xlu0 %v116_v17  ;;  %v117_v18 = vmul.f32 %v97_v16, %v97_v16 }
  0xd1   :  { %122 = vadd.xlane.f32.xlu1 %v117_v18 }
  0xd3   :  { %110 = vadd.xlane.f32.xlu0 %v97_v16 }
  0xd5   :  { %126 = vadd.xlane.f32.xlu1 %v119_v19 }
  0xd7   :  { %124 = vadd.xlane.f32.xlu0 %v118_v20 }
 0x152   :  { %v113_v21 = vpop.xlane.xlu1 %112 }
 0x153   :  { %v130_v31 = vmul.f32 0.0078125, %v113_v21 }
 0x154   :  { %v109_v22 = vpop.xlane.xlu0 %108 }
 0x155   :  { %v128_v23 = vmul.f32 0.0078125, %v109_v22  ;;  %v138_v41 = vmul.f32 %v130_v31, %v130_v31  ;;  %v169_v2 = vsub.f32 %v350_v8, %v130_v31 }
 0x156   :  { %v115_v24 = vpop.xlane.xlu1 %114 }
 0x157   :  { %v136_v26 = vmul.f32 %v128_v23, %v128_v23  ;;  %v131_v28 = vmul.f32 0.0078125, %v115_v24  ;;  %v167_v56 = vsub.f32 %v94_v11, %v128_v23 }
 0x158   :  { %v121_v25 = vpop.xlane.xlu0 %120 }
 0x159   :  { %v132_v27 = vmul.f32 0.0078125, %v121_v25  ;;  %v139_v35 = vmul.f32 %v131_v28, %v131_v28  ;;  %v170_v63 = vsub.f32 %v353_v14, %v131_v28 }
 0x15a   :  { %v123_v29 = vpop.xlane.xlu1 %122 }
 0x15b   :  { %v140_v30 = vsub.f32 %v132_v27, %v136_v26  ;;  %v133_v38 = vmul.f32 0.0078125, %v123_v29 }
 0x15c   :  { %v111_v32 = vpop.xlane.xlu0 %110 }
 0x15d   :  { %v144_v33 = vmax.f32 %v140_v30, 0.0  ;;  %v129_v34 = vmul.f32 0.0078125, %v111_v32 }
 0x15e   :  { %v127_v36 = vpop.xlane.xlu1 %126 }
 0x15f   :  { %v148_v37 = vadd.f32 1e-12, %v144_v33  ;;  %v137_v39 = vmul.f32 %v129_v34, %v129_v34  ;;  %v135_v40 = vmul.f32 0.0078125, %v127_v36  ;;  %v168_v61 = vsub.f32 %v97_v16, %v129_v34 }
 0x160   :  { %v125_v42 = vpop.xlane.xlu0 %124 }
 0x161   :  { %272 = vrsqrt.f32 %v148_v37  ;;  %v141_v43 = vsub.f32 %v133_v38, %v137_v39  ;;  %v143_v44 = vsub.f32 %v135_v40, %v139_v35  ;;  %v134_v45 = vmul.f32 0.0078125, %v125_v42 }
 0x163   :  { %v145_v46 = vmax.f32 %v141_v43, 0.0  ;;  %v147_v47 = vmax.f32 %v143_v44, 0.0  ;;  %v142_v48 = vsub.f32 %v134_v45, %v138_v41 }
 0x165   :  { %v149_v49 = vadd.f32 1e-12, %v145_v46  ;;  %v151_v50 = vadd.f32 1e-12, %v147_v47  ;;  %v146_v51 = vmax.f32 %v142_v48, 0.0 }
 0x167   :  { %274 = vrsqrt.f32 %v149_v49  ;;  %v150_v52 = vadd.f32 1e-12, %v146_v51 }
 0x168   :  { %276 = vrsqrt.f32 %v151_v50 }
 0x169   :  { %278 = vrsqrt.f32 %v150_v52 }
 0x16e   :  { %v273_v53 = vpop.eup %272 }
 0x16f   :  { %v163_v55 = vmul.f32 %v273_v53, %v227_v54 }
 0x171   :  { %v171_v59 = vmul.f32 %v167_v56, %v163_v55 }
 0x173   :  { %v182_v6 = vadd.f32 %v228_v0, %v171_v59 }
 0x174   :  { %v275_v57 = vpop.eup %274 }
 0x175   :  { %v277_v58 = vpop.eup %276  ;;  %v164_v60 = vmul.f32 %v275_v57, %v227_v54 }
 0x176   :  { %v279_v62 = vpop.eup %278  ;;  %v166_v1 = vmul.f32 %v277_v58, %v227_v54 }
 0x177   :  { %v172_v3 = vmul.f32 %v168_v61, %v164_v60  ;;  %v165_v4 = vmul.f32 %v279_v62, %v227_v54 }
 0x178   :  { %v174_v5 = vmul.f32 %v170_v63, %v166_v1 }
 0x179   :  { %v183_v7 = vadd.f32 %v228_v0, %v172_v3  ;;  %v173_v9 = vmul.f32 %v169_v2, %v165_v4 }
 0x17a   :  { %v185_v12 = vadd.f32 %v228_v0, %v174_v5 }
 0x17b   :  { %v248_v10 = vpack.c.bf16 %v183_v7, %v182_v6  ;;  %v184_v11 = vadd.f32 %v228_v0, %v173_v9 }
 0x17d   :  { %249 = vst [vmem:[#allocation2] sm:$0xff] %v248_v10   ;;  %v253_v13 = vpack.c.bf16 %v185_v12, %v184_v11 }
 0x17f   :  { %256 = vst [vmem:[#allocation2 + $0x8] sm:$0xff] %v253_v13  }
 0x180   :  { %291 = shalt.err (!%p288_p4)
}
 0x181   :  { %s303_s4 = smov 64   ;;  %s304_s6 = smov 4  }
 0x182   :  { %217 = dma.vmem_to_hbm [thread:$0]  %s212_s29, 256, %s376_s5, [#allocation3], %s303_s4, %s303_s4, %s304_s6  }
 0x183   :  { %300 = dma.done.wait [#allocation3], 256  }
 0x184   :  { %301 = vsyncadd [#allocation3], 4294967040 }
 0x185   :  { %221 = vsyncpa [#allocation3], 1 }

</bundles_post_ra>
